<compile_context>
chip_gen: v7x
topology: tpu7x:2x2x1
jax: 0.10.0
libtpu: 0.0.40
codegen_flags: <defaults>
</compile_context>

<pallas_src>
import functools

import jax
import jax.numpy as jnp
from jax.experimental import pallas as pl
from jax.experimental.pallas import tpu as pltpu


def _round_up(x, m):
    return -(-x // m) * m


def _panoramic_kernel(xcol_ref, w_ref, shift_ref, pool_ref, o_ref):
    # xcol_ref:  (K_pad, CPT)        im2col'd input columns for this batch tile
    # w_ref:     (C_out_pad, K_pad)  weight with BN scale and 1/4 pool factor folded in
    # shift_ref: (C_out_pad, 1)      folded (bias/BN) shift (also x 1/4)
    # pool_ref:  (CPT, PPT)          0/1 block-diagonal avg-pool matrix
    # o_ref:     (C_out_pad, PPT)
    conv = jnp.dot(w_ref[...], xcol_ref[...], preferred_element_type=jnp.float32)
    y = jnp.maximum(conv + shift_ref[...], 0.0)          # bias + BN + ReLU
    o_ref[...] = jnp.dot(
        y, pool_ref[...], preferred_element_type=jnp.float32
    ).astype(o_ref.dtype)


@functools.partial(jax.jit, static_argnames=("padding",))
def panoramic_forward(x, weight, bias, gamma, beta, running_mean, running_var,
                      *, padding, eps=1e-5):
    """Equivalent of PanoramicModule.forward in eval mode."""
    n, c_in, length = x.shape
    c_out = weight.shape[0]
    l_pad = length + 2 * padding
    l_out = l_pad - 2                       # conv: k=3, stride=1
    l_pool = (l_out - 4) // 2 + 1           # avgpool: k=4, stride=2

    # Coarse batch tiles: one grid step per tile (single step for small N).
    bt = min(n, max(1, 512 // l_out))
    num_tiles = -(-n // bt)
    n_total = num_tiles * bt

    k_dim = 3 * c_in
    k_pad = _round_up(k_dim, 8)
    c_out_pad = _round_up(c_out, 8)
    cpt = _round_up(bt * l_out, 128)        # conv columns per tile (lane-dense)
    ppt = _round_up(bt * l_pool, 128)       # pooled columns per tile (lane-dense)

    f32 = jnp.float32
    x = x.astype(f32)

    # im2col: x_col[k*C_in + c, tile, e*l_out + l] = x_padded[tile*bt + e, c, l + k]
    x_sp = jnp.pad(x, ((0, n_total - n), (0, 0), (padding, padding)))
    cols = jnp.stack([x_sp[:, :, k:k + l_out] for k in range(3)], axis=0)
    cols = cols.transpose(0, 2, 1, 3).reshape(k_dim, n_total, l_out)
    cols = cols.reshape(k_dim, num_tiles, bt * l_out)
    cols = jnp.pad(cols, ((0, k_pad - k_dim), (0, 0), (0, cpt - bt * l_out)))
    x_col = cols.reshape(k_pad, num_tiles * cpt)

    # Fold BN (eval), conv bias and the 1/4 avg-pool factor into weight/shift:
    # relu(s*z + b) * 0.25 == relu(0.25*s*z + 0.25*b)
    inv_std = 1.0 / jnp.sqrt(running_var.astype(f32) + eps)
    scale = gamma.astype(f32) * inv_std * 0.25
    w_scaled = weight.astype(f32) * scale[:, None, None]           # (C_out, C_in, 3)
    w_flat = w_scaled.transpose(0, 2, 1).reshape(c_out, k_dim)     # (C_out, 3*C_in)
    w_flat = jnp.pad(w_flat, ((0, c_out_pad - c_out), (0, k_pad - k_dim)))
    shift = (bias.astype(f32) - running_mean.astype(f32)) * scale \
        + beta.astype(f32) * 0.25
    shift = jnp.pad(shift, (0, c_out_pad - c_out)).reshape(c_out_pad, 1)

    # 0/1 block-diagonal pool matrix (per batch element within the tile).
    l_idx = jnp.arange(l_out)[:, None]
    t_idx = jnp.arange(l_pool)[None, :]
    blk = ((l_idx >= 2 * t_idx) & (l_idx <= 2 * t_idx + 3)).astype(f32)
    pool = jnp.kron(jnp.eye(bt, dtype=f32), blk)                   # (bt*l_out, bt*l_pool)
    pool = jnp.pad(pool, ((0, cpt - bt * l_out), (0, ppt - bt * l_pool)))

    # TODO(synk): Dropout(p=0.5) and BatchNorm batch-statistics (training mode)
    # are not modeled; this implements inference-mode semantics
    # (dropout = identity, BN uses running statistics).

    out = pl.pallas_call(
        _panoramic_kernel,
        out_shape=jax.ShapeDtypeStruct((num_tiles, c_out_pad, ppt), f32),
        grid=(num_tiles,),
        in_specs=[
            pl.BlockSpec((k_pad, cpt), lambda i: (0, i)),
            pl.BlockSpec((c_out_pad, k_pad), lambda i: (0, 0)),
            pl.BlockSpec((c_out_pad, 1), lambda i: (0, 0)),
            pl.BlockSpec((cpt, ppt), lambda i: (0, 0)),
        ],
        out_specs=pl.BlockSpec((None, c_out_pad, ppt), lambda i: (i, 0, 0)),
        compiler_params=pltpu.CompilerParams(
            dimension_semantics=("parallel",)),
    )(x_col, w_flat, shift, pool)

    # (num_tiles, C_out_pad, PPT) -> (N, C_out, l_pool); drop all padding.
    out = out[:, :c_out, :bt * l_pool]
    out = out.reshape(num_tiles, c_out, bt, l_pool)
    out = out.transpose(0, 2, 1, 3).reshape(num_tiles * bt, c_out, l_pool)
    return out[:n]


def _reference_forward(x, weight, bias, gamma, beta, running_mean, running_var,
                       padding, eps=1e-5):
    """Pure-JAX reference (eval mode) for correctness checking."""
    n, c_in, length = x.shape
    l_out = length + 2 * padding - 2
    l_pool = (l_out - 4) // 2 + 1
    x_pad = jnp.pad(x, ((0, 0), (0, 0), (padding, padding)))
    conv = jnp.zeros((n, weight.shape[0], l_out), jnp.float32)
    for k in range(3):
        conv += jnp.einsum("oc,ncl->nol", weight[:, :, k],
                           x_pad[:, :, k:k + l_out])
    conv += bias[None, :, None]
    y = (conv - running_mean[None, :, None]) / jnp.sqrt(
        running_var[None, :, None] + eps)
    y = y * gamma[None, :, None] + beta[None, :, None]
    y = jnp.maximum(y, 0.0)
    windows = jnp.stack(
        [y[:, :, 2 * t:2 * t + 4].mean(axis=-1) for t in range(l_pool)],
        axis=-1)
    return windows


if __name__ == "__main__":
    # Shapes consistent with PanoramicModule(14, 36, 1): input is (N, 14, L).
    N, C_IN, L = 2, 14, 64
    C_OUT, PAD = 36, 1

    key = jax.random.PRNGKey(0)
    kx, kw, kb, kg, kbt, km, kv = jax.random.split(key, 7)

    x = jax.random.normal(kx, (N, C_IN, L), jnp.float32)
    weight = jax.random.normal(kw, (C_OUT, C_IN, 3), jnp.float32) * 0.1
    bias = jax.random.normal(kb, (C_OUT,), jnp.float32) * 0.1
    gamma = 1.0 + 0.1 * jax.random.normal(kg, (C_OUT,), jnp.float32)
    beta = 0.1 * jax.random.normal(kbt, (C_OUT,), jnp.float32)
    running_mean = 0.1 * jax.random.normal(km, (C_OUT,), jnp.float32)
    running_var = jnp.abs(1.0 + 0.1 * jax.random.normal(kv, (C_OUT,),
                                                        jnp.float32))

    out = panoramic_forward(x, weight, bias, gamma, beta, running_mean,
                            running_var, padding=PAD)
    out = jax.block_until_ready(out)

    ref = _reference_forward(x, weight, bias, gamma, beta, running_mean,
                             running_var, PAD)
    assert out.shape == ref.shape, (out.shape, ref.shape)
    assert jnp.max(jnp.abs(out - ref)) < 1e-4, float(jnp.max(jnp.abs(out - ref)))

    print("KERNEL_OK")
</pallas_src>

<mosaic_0001>
module attributes {stable_mosaic.version = 11 : i64} {
  func.func @_panoramic_kernel(%arg0: i32, %arg1: memref<48x128xf32, #tpu.memory_space<vmem>>, %arg2: memref<40x48xf32, #tpu.memory_space<vmem>>, %arg3: memref<40x1xf32, #tpu.memory_space<vmem>>, %arg4: memref<128x128xf32, #tpu.memory_space<vmem>>, %arg5: memref<1x40x128xf32, #tpu.memory_space<vmem>>) attributes {dimension_semantics = [#tpu.dimension_semantics<parallel>], iteration_bounds = array<i64: 1>, scalar_prefetch = 0 : i64, scratch_operands = 0 : i64, tpu.core_type = #tpu.core_type<tc>, window_params = [{transform_indices = @transform_0, window_bounds = array<i64: 48, 128>}, {pipeline_mode = #tpu.pipeline_mode<synchronous>, transform_indices = @transform_1, window_bounds = array<i64: 40, 48>}, {pipeline_mode = #tpu.pipeline_mode<synchronous>, transform_indices = @transform_2, window_bounds = array<i64: 40, 1>}, {pipeline_mode = #tpu.pipeline_mode<synchronous>, transform_indices = @transform_3, window_bounds = array<i64: 128, 128>}, {transform_indices = @transform_4, window_bounds = array<i64: 1, 40, 128>}]} {
    %c0 = arith.constant 0 : index
    %c0_0 = arith.constant 0 : index
    %0 = vector.load %arg2[%c0, %c0_0] : memref<40x48xf32, #tpu.memory_space<vmem>>, vector<40x48xf32>
    %c0_1 = arith.constant 0 : index
    %c0_2 = arith.constant 0 : index
    %1 = vector.load %arg1[%c0_1, %c0_2] : memref<48x128xf32, #tpu.memory_space<vmem>>, vector<48x128xf32>
    %cst = arith.constant dense<0.000000e+00> : vector<40x128xf32>
    %2 = tpu.matmul %0, %1, %cst {dimension_numbers = #tpu.dot_dimension_numbers<[1], [0], [0], [1], [0, 0, 1, 1], [], []>} : vector<40x48xf32>, vector<48x128xf32>, vector<40x128xf32> -> vector<40x128xf32>
    %c0_3 = arith.constant 0 : index
    %c0_4 = arith.constant 0 : index
    %3 = vector.load %arg3[%c0_3, %c0_4] : memref<40x1xf32, #tpu.memory_space<vmem>>, vector<40x1xf32>
    %4 = vector.broadcast %3 : vector<40x1xf32> to vector<40x128xf32>
    %5 = arith.addf %2, %4 : vector<40x128xf32>
    %cst_5 = arith.constant 0.000000e+00 : f32
    %6 = vector.broadcast %cst_5 : f32 to vector<40x128xf32>
    %7 = arith.maximumf %5, %6 : vector<40x128xf32>
    %c0_6 = arith.constant 0 : index
    %c0_7 = arith.constant 0 : index
    %8 = vector.load %arg4[%c0_6, %c0_7] : memref<128x128xf32, #tpu.memory_space<vmem>>, vector<128x128xf32>
    %cst_8 = arith.constant dense<0.000000e+00> : vector<40x128xf32>
    %9 = tpu.matmul %7, %8, %cst_8 {dimension_numbers = #tpu.dot_dimension_numbers<[1], [0], [0], [1], [0, 0, 1, 1], [], []>} : vector<40x128xf32>, vector<128x128xf32>, vector<40x128xf32> -> vector<40x128xf32>
    %c0_9 = arith.constant 0 : index
    %c0_10 = arith.constant 0 : index
    %c0_11 = arith.constant 0 : index
    %10 = vector.load %arg5[%c0_9, %c0_10, %c0_11] : memref<1x40x128xf32, #tpu.memory_space<vmem>>, vector<1x40x128xf32>
    %11 = vector.shape_cast %10 : vector<1x40x128xf32> to vector<40x128xf32>
    %12 = vector.shape_cast %9 : vector<40x128xf32> to vector<1x40x128xf32>
    tpu.vector_store %arg5[%c0_9, %c0_10, %c0_11], %12 {strides = array<i32>} : memref<1x40x128xf32, #tpu.memory_space<vmem>>, vector<1x40x128xf32>,
    return
  }
  func.func @transform_0(%arg0: i32) -> (i32, i32) {
    %c0_i32 = arith.constant 0 : i32
    %c0_i32_0 = arith.constant 0 : i32
    return %c0_i32, %arg0 : i32, i32
  }
  func.func @transform_1(%arg0: i32) -> (i32, i32) {
    %c0_i32 = arith.constant 0 : i32
    %c0_i32_0 = arith.constant 0 : i32
    %c0_i32_1 = arith.constant 0 : i32
    return %c0_i32, %c0_i32_0 : i32, i32
  }
  func.func @transform_2(%arg0: i32) -> (i32, i32) {
    %c0_i32 = arith.constant 0 : i32
    %c0_i32_0 = arith.constant 0 : i32
    %c0_i32_1 = arith.constant 0 : i32
    return %c0_i32, %c0_i32_0 : i32, i32
  }
  func.func @transform_3(%arg0: i32) -> (i32, i32) {
    %c0_i32 = arith.constant 0 : i32
    %c0_i32_0 = arith.constant 0 : i32
    %c0_i32_1 = arith.constant 0 : i32
    return %c0_i32, %c0_i32_0 : i32, i32
  }
  func.func @transform_4(%arg0: i32) -> (i32, i32, i32) {
    %c0_i32 = arith.constant 0 : i32
    %c0_i32_0 = arith.constant 0 : i32
    %c0_i32_1 = arith.constant 0 : i32
    return %arg0, %c0_i32, %c0_i32_0 : i32, i32, i32
  }
}

</mosaic_0001>

<bundles_post_ra>
// kernel: panoramic_forward.1
= control target key start
LH: loop header
LB: loop body
LE: loop exit
PB: predicated region body
PF: predicated region fallthrough
CT: control target
= control target key end

     0   :  { %v450_v0 = vmov 0.0|0.0   ;;  %vm451_vm0 = vmmov 0   ;;  %v452_v4 = vmov 0.0   ;;  %v453_v7 = vmov 0   ;;  %s634_s0 = inlined_call_operand.vmem [shape: f32[48,128], index: 0, kind: input, shape index: {}]   ;;  %s635_s2 = inlined_call_operand.vmem [shape: f32[40,1], index: 2, kind: input, shape index: {}]   ;;  %s636_s3 = inlined_call_operand.vmem [shape: f32[128,128], index: 3, kind: input, shape index: {}]   ;;  %s637_s1 = inlined_call_operand.vmem [shape: f32[40,48], index: 1, kind: input, shape index: {}]   ;;  %s638_s4 = inlined_call_operand.vmem [shape: f32[1,40,128], index: 4, kind: output, shape index: {}]  }
   0x1   :  { %395 = vmatprep.subr.bf16.mxu0 %v450_v0  ;;  %v22_v1 = vld [vmem:[%s634_s0] sm:$0xff]  ;;  %v23_v2 = vld [vmem:[%s634_s0 + $0x8] sm:$0xff]  ;;  %v24_v3 = vld [vmem:[%s634_s0 + $0x10] sm:$0xff]  ;;  %333 = vmatprep.mubr.msk.f32.mxu0 %vm451_vm0, %v452_v4  ;;  %vm58_vm1 = vcmask 392192  }
   0x2   :  { %v396_v5 = vpack.c.bf16 %v23_v2, %v22_v1  ;;  %v25_v6 = vld [vmem:[%s634_s0 + $0x18] sm:$0xff]  ;;  %449 = vset.pattern.permute.xlu1 %v453_v7  ;;  %448 = vset.pattern.permute.xlu0 %v453_v7  ;;  %v26_v10 = vld [vmem:[%s634_s0 + $0x20] sm:$0xff]  ;;  %v27_v11 = vld [vmem:[%s634_s0 + $0x28] sm:$0xff] }
   0x3   :  { %428 = vmatprep.subr.bf16.mxu1 %v450_v0  ;;  %383 = vmatprep.mubr.msk.f32.mxu1 %vm451_vm0, %v452_v4  ;;  %v399_v8 = vpack.c.bf16 %v25_v6, %v24_v3  ;;  %v31_v9 = vld [vmem:[%s635_s2 + $0x18] sm:$0xff]  ;;  %v29_v12 = vld [vmem:[%s635_s2 + $0x8] sm:$0xff]  ;;  %v28_v13 = vld [vmem:[%s635_s2] sm:$0xff]  ;;  %v402_v17 = vpack.c.bf16 %v27_v11, %v26_v10 }
   0x4   :  { %397 = vmatpush3.bf16.msra.mxu0 %v396_v5  ;;  %50 = vperm.xlu1 %449, %v31_v9   ;;  %v169_v14 = vld [vmem:[%s636_s3] sm:$0xff]  ;;  %v170_v15 = vld [vmem:[%s636_s3 + $0x8] sm:$0xff]  ;;  %v30_v16 = vld [vmem:[%s635_s2 + $0x10] sm:$0xff] }
   0x5   :  { %398 = vmatprep.subr.bf16.mxu0 %v450_v0  ;;  %40 = vperm.xlu0 %448, %v29_v12   ;;  %v405_v18 = vpack.c.bf16 %v170_v15, %v169_v14  ;;  %v171_v19 = vld [vmem:[%s636_s3 + $0x10] sm:$0xff]  ;;  %v172_v20 = vld [vmem:[%s636_s3 + $0x18] sm:$0xff]  ;;  %v32_v21 = vld [vmem:[%s635_s2 + $0x20] sm:$0xff] }
   0x6   :  { %v17_v22 = vld [vmem:[%s637_s1] sm:$0xff]  ;;  %v408_v23 = vpack.c.bf16 %v172_v20, %v171_v19  ;;  %v174_v25 = vld [vmem:[%s636_s3 + $0x28] sm:$0xff]  ;;  %v175_v28 = vld [vmem:[%s636_s3 + $0x30] sm:$0xff] }
   0x7   :  { %436 = vmatpush3.bf16.msra.mxu1 %v405_v18  ;;  %v173_v24 = vld [vmem:[%s636_s3 + $0x20] sm:$0xff]  ;;  %v18_v26 = vld [vmem:[%s637_s1 + $0x8] sm:$0xff]  ;;  %v176_v29 = vld [vmem:[%s636_s3 + $0x38] sm:$0xff] }
   0x8   :  { %400 = vmatpush3.bf16.msra.mxu0 %v399_v8  ;;  %35 = vperm.xlu1 %449, %v28_v13   ;;  %v411_v27 = vpack.c.bf16 %v174_v25, %v173_v24  ;;  %v19_v30 = vld [vmem:[%s637_s1 + $0x10] sm:$0xff]  ;;  %v414_v31 = vpack.c.bf16 %v176_v29, %v175_v28  ;;  %v177_v32 = vld [vmem:[%s636_s3 + $0x40] sm:$0xff]  ;;  %v178_v33 = vld [vmem:[%s636_s3 + $0x48] sm:$0xff] }
   0x9   :  { %401 = vmatprep.subr.bf16.mxu0 %v450_v0  ;;  %45 = vperm.xlu0 %448, %v30_v16   ;;  %v20_v34 = vld [vmem:[%s637_s1 + $0x18] sm:$0xff]  ;;  %v417_v35 = vpack.c.bf16 %v178_v33, %v177_v32  ;;  %v179_v36 = vld [vmem:[%s636_s3 + $0x50] sm:$0xff]  ;;  %v21_v38 = vld [vmem:[%s637_s1 + $0x20] sm:$0xff] }
   0xa   :  { %429 = vmatprep.subr.bf16.mxu1 %v450_v0  ;;  %v180_v37 = vld [vmem:[%s636_s3 + $0x58] sm:$0xff]  ;;  %v181_v40 = vld [vmem:[%s636_s3 + $0x60] sm:$0xff]  ;;  %v182_v41 = vld [vmem:[%s636_s3 + $0x68] sm:$0xff] }
   0xb   :  { %437 = vmatpush3.bf16.msra.mxu1 %v408_v23  ;;  %v420_v39 = vpack.c.bf16 %v180_v37, %v179_v36  ;;  %v423_v42 = vpack.c.bf16 %v182_v41, %v181_v40  ;;  %v183_v43 = vld [vmem:[%s636_s3 + $0x70] sm:$0xff]  ;;  %v184_v44 = vld [vmem:[%s636_s3 + $0x78] sm:$0xff] }
   0xc   :  { %403 = vmatpush3.bf16.msra.mxu0 %v402_v17  ;;  %430 = vmatprep.subr.bf16.mxu1 %v450_v0  ;;  %v426_v45 = vpack.c.bf16 %v184_v44, %v183_v43 }
   0xd   :  { %404 = vmatprep.subr.bf16.mxu0 %v450_v0  ;;  %55 = vperm.xlu0 %448, %v32_v21  }
   0xf   :  { %334 = vmatmul.mubr.msk.f32.vlgmr.msra.gmra.mrb[0].mxu0 %vm58_vm1, %v17_v22  ;;  %438 = vmatpush3.bf16.msra.mxu1 %v411_v27 }
  0x10   :  { %336 = vmatprep.mubr.msk.f32.mxu0 %vm451_vm0, %v452_v4  ;;  %406 = vmatpush3.bf16.msra.mxu0 %v405_v18 }
  0x11   :  { %407 = vmatprep.subr.bf16.mxu0 %v450_v0  ;;  %431 = vmatprep.subr.bf16.mxu1 %v450_v0 }
  0x13   :  { %337 = vmatmul.mubr.msk.f32.gmra.mrb[2].mxu0 %vm58_vm1, %v18_v26  ;;  %439 = vmatpush3.bf16.msra.mxu1 %v414_v31 }
  0x14   :  { %339 = vmatprep.mubr.msk.f32.mxu0 %vm451_vm0, %v452_v4  ;;  %409 = vmatpush3.bf16.msra.mxu0 %v408_v23 }
  0x15   :  { %410 = vmatprep.subr.bf16.mxu0 %v450_v0  ;;  %432 = vmatprep.subr.bf16.mxu1 %v450_v0 }
  0x17   :  { %340 = vmatmul.mubr.msk.f32.gmra.mrb[4].mxu0 %vm58_vm1, %v19_v30  ;;  %440 = vmatpush3.bf16.msra.mxu1 %v417_v35 }
  0x18   :  { %342 = vmatprep.mubr.msk.f32.mxu0 %vm451_vm0, %v452_v4  ;;  %412 = vmatpush3.bf16.msra.mxu0 %v411_v27 }
  0x19   :  { %413 = vmatprep.subr.bf16.mxu0 %v450_v0  ;;  %433 = vmatprep.subr.bf16.mxu1 %v450_v0 }
  0x1b   :  { %343 = vmatmul.mubr.msk.f32.gmra.mrb[6].mxu0 %vm58_vm1, %v20_v34  ;;  %441 = vmatpush3.bf16.msra.mxu1 %v420_v39 }
  0x1c   :  { %345 = vmatprep.mubr.msk.f32.mxu0 %vm451_vm0, %v452_v4  ;;  %415 = vmatpush3.bf16.msra.mxu0 %v414_v31 }
  0x1d   :  { %416 = vmatprep.subr.bf16.mxu0 %v450_v0  ;;  %434 = vmatprep.subr.bf16.mxu1 %v450_v0 }
  0x1f   :  { %346 = vmatmul.mubr.msk.f32.gmra.mrb[8].mxu0 %vm58_vm1, %v21_v38  ;;  %442 = vmatpush3.bf16.msra.mxu1 %v423_v42 }
  0x20   :  { %418 = vmatpush3.bf16.msra.mxu0 %v417_v35  ;;  %380 = vmatprep.mubr.msk.f32.mxu0 %vm451_vm0, %v452_v4 }
  0x21   :  { %419 = vmatprep.subr.bf16.mxu0 %v450_v0  ;;  %435 = vmatprep.subr.bf16.mxu1 %v450_v0 }
  0x23   :  { %443 = vmatpush3.bf16.msra.mxu1 %v426_v45 }
  0x24   :  { %421 = vmatpush3.bf16.msra.mxu0 %v420_v39 }
  0x25   :  { %422 = vmatprep.subr.bf16.mxu0 %v450_v0 }
  0x28   :  { %424 = vmatpush3.bf16.msra.mxu0 %v423_v42 }
  0x29   :  { %425 = vmatprep.subr.bf16.mxu0 %v450_v0 }
  0x2c   :  { %427 = vmatpush3.bf16.msra.mxu0 %v426_v45 }
  0x83   :  { %v51_v46 = vpop.permute.xlu1 %50 }
  0x84   :  { %v41_v51 = vpop.permute.xlu0 %40 }
  0x87   :  { %v36_v47 = vpop.permute.xlu1 %35 }
  0x88   :  { %v46_v57 = vpop.permute.xlu0 %45 }
  0x8c   :  { %v56_v2 = vpop.permute.xlu0 %55 }
  0xe2   :  { %v140_v48 = vpop.f32.mrb[0].mxu0 }
  0xe3   :  { %v141_v49 = vadd.f32 %v140_v48, %v36_v47  ;;  %v335_v50 = vpop.f32.mrb[1].mxu0 }
  0xe5   :  { %v164_v52 = vmax.f32 %v141_v49, 0.0 }
  0xe6   :  { %v145_v53 = vpop.f32.mrb[2].mxu0 }
  0xe7   :  { %v146_v54 = vadd.f32 %v145_v53, %v41_v51  ;;  %v338_v55 = vpop.f32.mrb[3].mxu0  ;;  %381 = vmatmul.mubr.f32.vlgmr.msra.gmra.mrb[10].mxu0 %v164_v52 }
  0xe9   :  { %v165_v56 = vmax.f32 %v146_v54, 0.0 }
  0xea   :  { %v150_v58 = vpop.f32.mrb[4].mxu0 }
  0xeb   :  { %v151_v59 = vadd.f32 %v150_v58, %v46_v57  ;;  %v341_v60 = vpop.f32.mrb[5].mxu0  ;;  %384 = vmatmul.mubr.f32.vlgmr.msra.gmra.mrb[0].mxu1 %v165_v56 }
  0xec   :  { %386 = vmatprep.mubr.msk.f32.mxu1 %vm451_vm0, %v452_v4 }
  0xed   :  { %v166_v61 = vmax.f32 %v151_v59, 0.0 }
  0xee   :  { %v155_v62 = vpop.f32.mrb[6].mxu0 }
  0xef   :  { %v156_v63 = vadd.f32 %v155_v62, %v51_v46  ;;  %v344_v0 = vpop.f32.mrb[7].mxu0  ;;  %387 = vmatmul.mubr.f32.gmra.mrb[2].mxu1 %v166_v61 }
  0xf0   :  { %389 = vmatprep.mubr.msk.f32.mxu1 %vm451_vm0, %v452_v4 }
  0xf1   :  { %v167_v1 = vmax.f32 %v156_v63, 0.0 }
  0xf2   :  { %v160_v3 = vpop.f32.mrb[8].mxu0 }
  0xf3   :  { %v161_v5 = vadd.f32 %v160_v3, %v56_v2  ;;  %v347_v6 = vpop.f32.mrb[9].mxu0  ;;  %390 = vmatmul.mubr.f32.gmra.mrb[4].mxu1 %v167_v1 }
  0xf4   :  { %392 = vmatprep.mubr.msk.f32.mxu1 %vm451_vm0, %v452_v4 }
  0xf5   :  { %v168_v7 = vmax.f32 %v161_v5, 0.0 }
  0xf7   :  { %393 = vmatmul.mubr.f32.gmra.mrb[6].mxu1 %v168_v7 }
 0x1ba   :  { %v251_v8 = vpop.f32.mrb[10].mxu0 }
 0x1bb   :  { %275 = vst [vmem:[%s638_s4] sm:$0xff] %v251_v8  ;;  %v382_v9 = vpop.f32.mrb[11].mxu0 }
 0x1be   :  { %v256_v10 = vpop.f32.mrb[0].mxu1 }
 0x1bf   :  { %276 = vst [vmem:[%s638_s4 + $0x8] sm:$0xff] %v256_v10  ;;  %v385_v11 = vpop.f32.mrb[1].mxu1 }
 0x1c2   :  { %v261_v12 = vpop.f32.mrb[2].mxu1 }
 0x1c3   :  { %277 = vst [vmem:[%s638_s4 + $0x10] sm:$0xff] %v261_v12  ;;  %v388_v4 = vpop.f32.mrb[3].mxu1 }
 0x1c6   :  { %v266_v13 = vpop.f32.mrb[4].mxu1 }
 0x1c7   :  { %278 = vst [vmem:[%s638_s4 + $0x18] sm:$0xff] %v266_v13  ;;  %v391_v14 = vpop.f32.mrb[5].mxu1 }
 0x1ca   :  { %v271_v15 = vpop.f32.mrb[6].mxu1 }
 0x1cb   :  { %279 = vst [vmem:[%s638_s4 + $0x20] sm:$0xff] %v271_v15  ;;  %v394_v16 = vpop.f32.mrb[7].mxu1 }

</bundles_post_ra>
